<compile_context>
chip_gen: v7x
topology: tpu7x:2x2x1
jax: 0.10.0
libtpu: 0.0.40
codegen_flags: <defaults>
</compile_context>

<pallas_src>
import functools

import jax
import jax.numpy as jnp
import numpy as np
from jax.experimental import pallas as pl
from jax.experimental.pallas import tpu as pltpu


def _round_up(n: int, m: int) -> int:
    return ((n + m - 1) // m) * m


def _make_kernel(T: int, P: int):
    """Kernel over one batch block. Emits 3 partial sums in lanes 0..2 of a dense slab."""

    def kernel(lm1_ref, invden_ref, tlane_ref, invg_ref,
               cov_ref, pred_ref, theta_ref, o_ref):
        # Native-dtype loads, upcast in-register (no f32 copy in HBM).
        cov = cov_ref[...].astype(jnp.float32)       # (bB, Lc)
        pred = pred_ref[...].astype(jnp.float32)     # (bB, Lc)
        theta = theta_ref[...].astype(jnp.float32)   # (bB, Lp)
        Lp = theta.shape[1]

        # ---- step-ahead covariate regularization (per-row masked mean) ----
        d2 = (cov - pred) ** 2                                           # (bB, Lc)
        valid = (tlane_ref[...] < lm1_ref[...]).astype(jnp.float32)      # (bB, Lc)
        per_ind = jnp.sum(d2 * valid, axis=1, keepdims=True) * invden_ref[...]
        part_step = jnp.sum(per_ind)

        # ---- drift regularization: pair time t with t+1 via one lane roll ----
        # roll matches jnp.roll: result[l] = theta[(l - (Lp-P)) % Lp] = theta[l + P]
        theta_next = pltpu.roll(theta, Lp - P, axis=1)
        lane = jax.lax.broadcasted_iota(jnp.int32, (1, Lp), 1)
        dmask = (lane < (T - 1) * P).astype(jnp.float32)
        dd = theta - theta_next
        part_drift = jnp.sum(dd * dd * dmask)

        # ---- global diff regularization (multiply by precomputed 1/global_theta) ----
        gmask = (lane < T * P).astype(jnp.float32)
        rel = theta * invg_ref[...] - 1.0
        part_glob = jnp.sum(rel * rel * gmask)

        # Lane/sublane-dense output block; partial sums live in lanes 0..2.
        lane_o = jax.lax.broadcasted_iota(jnp.int32, (1, 8, 128), 2)
        out_blk = (jnp.where(lane_o == 0, part_step, 0.0)
                   + jnp.where(lane_o == 1, part_drift, 0.0)
                   + jnp.where(lane_o == 2, part_glob, 0.0))
        o_ref[...] = out_blk.astype(jnp.float32)

    return kernel


@functools.partial(jax.jit, static_argnames=("block_rows",))
def regularization_theta_per_step(weights, traj_lens, cov_trajs, step_ahead_cov_preds,
                                  pred_params, global_theta, *, block_rows=None):
    """Scalar weighted regularization (torch forward with ret_each_term=False).

    weights = [step_ahead_cov_reg, drift_reg, global_diff_reg].
    """
    B, T, C = cov_trajs.shape
    P = pred_params.shape[-1]
    Tm1, Cm1 = T - 1, C - 1
    n_sc = Tm1 * Cm1
    Lc = _round_up(max(n_sc, 1), 128)
    Lp = _round_up(T * P, 128)

    # --- lane-dense flattening (wrapper-side layout plumbing, native dtype kept) ---
    cov_tail = cov_trajs[:, 1:, 1:].reshape(B, n_sc)
    pred_flat = step_ahead_cov_preds.reshape(B, n_sc)
    theta_flat = pred_params.reshape(B, T * P)

    def pad_lanes(x, L):
        pad = L - x.shape[-1]
        return x if pad == 0 else jnp.pad(x, ((0, 0), (0, pad)))

    cov_tail = pad_lanes(cov_tail, Lc)
    pred_flat = pad_lanes(pred_flat, Lc)
    theta_flat = pad_lanes(theta_flat, Lp)

    # --- tiny per-row scalars; exact reciprocals precomputed (VPU multiplies in-kernel) ---
    lm1 = traj_lens.astype(jnp.float32).reshape(B, 1) - 1.0              # len_i - 1
    invden = 1.0 / (jnp.maximum(lm1, 1.0) * float(Cm1))                  # 1/((len-1)*(C-1))

    # static lane -> time index for the step-ahead mask (pad lanes get T => never valid)
    t_idx = jnp.arange(Lc, dtype=jnp.int32) // Cm1
    t_lane = jnp.where(jnp.arange(Lc) < n_sc, t_idx, T).astype(jnp.float32).reshape(1, Lc)

    # 1/global_theta tiled over time, zero in padded lanes
    g = global_theta.astype(jnp.float32).reshape(P)
    invg = jnp.pad(jnp.tile(1.0 / g, T), (0, Lp - T * P)).reshape(1, Lp)

    # --- batch tiling: keep double-buffered blocks well inside VMEM (v7x: 64 MiB) ---
    itemsize = max(jnp.dtype(cov_trajs.dtype).itemsize, jnp.dtype(pred_params.dtype).itemsize)
    bytes_per_row = (2 * Lc + Lp) * itemsize
    if block_rows is not None:
        bB = int(block_rows)
    elif B <= 8:
        bB = B
    else:
        budget = 8 * 1024 * 1024                       # per-block byte target
        bB = max(8, min((budget // bytes_per_row) // 8 * 8, _round_up(B, 8)))
    B_pad = _round_up(B, bB)
    nb = B_pad // bB

    if B_pad > B:
        padB = B_pad - B
        cov_tail = jnp.concatenate([cov_tail, jnp.zeros((padB, Lc), cov_tail.dtype)], axis=0)
        pred_flat = jnp.concatenate([pred_flat, jnp.zeros((padB, Lc), pred_flat.dtype)], axis=0)
        # pad theta rows with tiled global theta so drift/global contributions vanish
        g_row = jnp.pad(jnp.tile(g, T), (0, Lp - T * P)).astype(theta_flat.dtype).reshape(1, Lp)
        theta_flat = jnp.concatenate([theta_flat, jnp.broadcast_to(g_row, (padB, Lp))], axis=0)
        lm1 = jnp.concatenate([lm1, jnp.zeros((padB, 1), jnp.float32)], axis=0)
        invden = jnp.concatenate([invden, jnp.ones((padB, 1), jnp.float32)], axis=0)

    out = pl.pallas_call(
        _make_kernel(T, P),
        out_shape=jax.ShapeDtypeStruct((nb, 8, 128), jnp.float32),
        grid=(nb,),
        in_specs=[
            pl.BlockSpec((bB, 1), lambda i: (i, 0)),    # lens - 1
            pl.BlockSpec((bB, 1), lambda i: (i, 0)),    # 1/((lens-1)*(C-1))
            pl.BlockSpec((1, Lc), lambda i: (0, 0)),    # lane -> time index
            pl.BlockSpec((1, Lp), lambda i: (0, 0)),    # 1/global_theta (tiled over T)
            pl.BlockSpec((bB, Lc), lambda i: (i, 0)),   # cov_trajs[:, 1:, 1:], lane-dense
            pl.BlockSpec((bB, Lc), lambda i: (i, 0)),   # step_ahead_cov_preds, lane-dense
            pl.BlockSpec((bB, Lp), lambda i: (i, 0)),   # pred_params, lane-dense
        ],
        out_specs=pl.BlockSpec((1, 8, 128), lambda i: (i, 0, 0)),
        compiler_params=pltpu.CompilerParams(
            dimension_semantics=("parallel",)),         # independent batch blocks (v7x 2 TCs)
    )(lm1, invden, t_lane, invg, cov_tail, pred_flat, theta_flat)

    # tiny scalar epilogue: cross-block reduce, normalization, weighting
    parts = jnp.sum(out[:, 0, :], axis=0)
    w = weights.astype(jnp.float32)
    step_ahead = parts[0] / jnp.float32(B)
    drift = parts[1] / jnp.float32(B * (T - 1) * P)
    global_diff = parts[2] / jnp.float32(B * T * P)
    # TODO(synk): ret_each_term=True variant would return the three weighted terms here.
    return w[0] * step_ahead + w[1] * drift + w[2] * global_diff


def _reference(weights, traj_lens, cov_trajs, step_ahead_cov_preds, pred_params, global_theta):
    """NumPy reimplementation of the torch module (per-individual loop), for checking."""
    cov = np.asarray(cov_trajs, dtype=np.float64)
    pred = np.asarray(step_ahead_cov_preds, dtype=np.float64)
    theta = np.asarray(pred_params, dtype=np.float64)
    g = np.asarray(global_theta, dtype=np.float64).reshape(-1)
    lens = np.asarray(traj_lens).astype(int)
    w = np.asarray(weights, dtype=np.float64)
    B = cov.shape[0]
    per = np.zeros(B)
    for i in range(B):
        L = int(lens[i])
        if L > 1:
            d = cov[i, 1:L, 1:] - pred[i, :L - 1]
            per[i] = np.mean(d ** 2)
    step_ahead = per.mean()
    drift = np.mean((theta[:, :-1] - theta[:, 1:]) ** 2)
    gdiff = np.mean((theta / g - 1.0) ** 2)
    return float(w[0] * step_ahead + w[1] * drift + w[2] * gdiff)


if __name__ == "__main__":
    key = jax.random.PRNGKey(0)
    B, T, C, P = 4, 8, 5, 6   # batch, padded traj length, #covariates (incl. time col), #theta params

    k1, k2, k3 = jax.random.split(key, 3)
    cov_trajs = jax.random.normal(k1, (B, T, C), dtype=jnp.float32)
    step_ahead_cov_preds = jax.random.normal(k2, (B, T - 1, C - 1), dtype=jnp.float32)
    pred_params = jax.random.normal(k3, (B, T, P), dtype=jnp.float32)
    global_theta = 0.5 + 0.1 * jnp.arange(P, dtype=jnp.float32)   # keep away from zero
    traj_lens = jnp.array([8, 5, 1, 3], dtype=jnp.int32)          # includes a length-1 trajectory
    weights = jnp.array([0.7, 0.3, 0.2], dtype=jnp.float32)       # step_ahead / drift / global_diff

    out = regularization_theta_per_step(weights, traj_lens, cov_trajs,
                                        step_ahead_cov_preds, pred_params, global_theta)
    out = jax.block_until_ready(out)
    ref = _reference(weights, traj_lens, cov_trajs, step_ahead_cov_preds, pred_params, global_theta)
    assert abs(float(out) - ref) < 1e-4, (float(out), ref)

    # Second config exercising the multi-block parallel batch grid + batch padding path.
    B2 = 12
    kk = jax.random.split(jax.random.PRNGKey(1), 3)
    cov2 = jax.random.normal(kk[0], (B2, T, C), dtype=jnp.float32)
    pred2 = jax.random.normal(kk[1], (B2, T - 1, C - 1), dtype=jnp.float32)
    theta2 = jax.random.normal(kk[2], (B2, T, P), dtype=jnp.float32)
    traj_lens2 = jnp.array([8, 5, 1, 3, 7, 2, 8, 6, 4, 1, 8, 5], dtype=jnp.int32)
    out2 = jax.block_until_ready(regularization_theta_per_step(
        weights, traj_lens2, cov2, pred2, theta2, global_theta, block_rows=8))
    ref2 = _reference(weights, traj_lens2, cov2, pred2, theta2, global_theta)
    assert abs(float(out2) - ref2) < 1e-4, (float(out2), ref2)

    print("KERNEL_OK")
</pallas_src>

<mosaic_0001>
module attributes {stable_mosaic.version = 11 : i64} {
  func.func @kernel(%arg0: i32, %arg1: memref<4x1xf32, #tpu.memory_space<vmem>>, %arg2: memref<4x1xf32, #tpu.memory_space<vmem>>, %arg3: memref<1x128xf32, #tpu.memory_space<vmem>>, %arg4: memref<1x128xf32, #tpu.memory_space<vmem>>, %arg5: memref<4x128xf32, #tpu.memory_space<vmem>>, %arg6: memref<4x128xf32, #tpu.memory_space<vmem>>, %arg7: memref<4x128xf32, #tpu.memory_space<vmem>>, %arg8: memref<1x8x128xf32, #tpu.memory_space<vmem>>) attributes {dimension_semantics = [#tpu.dimension_semantics<parallel>], iteration_bounds = array<i64: 1>, scalar_prefetch = 0 : i64, scratch_operands = 0 : i64, tpu.core_type = #tpu.core_type<tc>, window_params = [{transform_indices = @transform_0, window_bounds = array<i64: 4, 1>}, {transform_indices = @transform_1, window_bounds = array<i64: 4, 1>}, {pipeline_mode = #tpu.pipeline_mode<synchronous>, transform_indices = @transform_2, window_bounds = array<i64: 1, 128>}, {pipeline_mode = #tpu.pipeline_mode<synchronous>, transform_indices = @transform_3, window_bounds = array<i64: 1, 128>}, {transform_indices = @transform_4, window_bounds = array<i64: 4, 128>}, {transform_indices = @transform_5, window_bounds = array<i64: 4, 128>}, {transform_indices = @transform_6, window_bounds = array<i64: 4, 128>}, {transform_indices = @transform_7, window_bounds = array<i64: 1, 8, 128>}]} {
    %c0 = arith.constant 0 : index
    %c0_0 = arith.constant 0 : index
    %0 = vector.load %arg5[%c0, %c0_0] : memref<4x128xf32, #tpu.memory_space<vmem>>, vector<4x128xf32>
    %c0_1 = arith.constant 0 : index
    %c0_2 = arith.constant 0 : index
    %1 = vector.load %arg6[%c0_1, %c0_2] : memref<4x128xf32, #tpu.memory_space<vmem>>, vector<4x128xf32>
    %c0_3 = arith.constant 0 : index
    %c0_4 = arith.constant 0 : index
    %2 = vector.load %arg7[%c0_3, %c0_4] : memref<4x128xf32, #tpu.memory_space<vmem>>, vector<4x128xf32>
    %3 = arith.subf %0, %1 : vector<4x128xf32>
    %4 = arith.mulf %3, %3 : vector<4x128xf32>
    %c0_5 = arith.constant 0 : index
    %c0_6 = arith.constant 0 : index
    %5 = vector.load %arg3[%c0_5, %c0_6] : memref<1x128xf32, #tpu.memory_space<vmem>>, vector<1x128xf32>
    %c0_7 = arith.constant 0 : index
    %c0_8 = arith.constant 0 : index
    %6 = vector.load %arg1[%c0_7, %c0_8] : memref<4x1xf32, #tpu.memory_space<vmem>>, vector<4x1xf32>
    %7 = vector.broadcast %5 : vector<1x128xf32> to vector<4x128xf32>
    %8 = vector.broadcast %6 : vector<4x1xf32> to vector<4x128xf32>
    %9 = arith.cmpf olt, %7, %8 : vector<4x128xf32>
    %10 = arith.extui %9 : vector<4x128xi1> to vector<4x128xi32>
    %11 = arith.sitofp %10 : vector<4x128xi32> to vector<4x128xf32>
    %12 = arith.mulf %4, %11 : vector<4x128xf32>
    %cst = arith.constant dense<0.000000e+00> : vector<4xf32>
    %13 = vector.multi_reduction <add>, %12, %cst [1] : vector<4x128xf32> to vector<4xf32>
    %14 = vector.shape_cast %13 : vector<4xf32> to vector<4x1xf32>
    %c0_9 = arith.constant 0 : index
    %c0_10 = arith.constant 0 : index
    %15 = vector.load %arg2[%c0_9, %c0_10] : memref<4x1xf32, #tpu.memory_space<vmem>>, vector<4x1xf32>
    %16 = arith.mulf %14, %15 : vector<4x1xf32>
    %17 = vector.shape_cast %16 : vector<4x1xf32> to vector<1x4x1xf32>
    %cst_11 = arith.constant dense<0.000000e+00> : vector<1xf32>
    %18 = vector.multi_reduction <add>, %17, %cst_11 [1, 2] : vector<1x4x1xf32> to vector<1xf32>
    %19 = vector.shape_cast %18 : vector<1xf32> to vector<1x1x1xf32>
    %20 = vector.extract %19[0, 0, 0] : f32 from vector<1x1x1xf32>
    %c122_i32 = arith.constant 122 : i32
    %21 = tpu.dynamic_rotate %2 by %c122_i32 dim 1 : vector<4x128xf32>, i32 -> vector<4x128xf32>
    %22 = tpu.iota {dimensions = array<i32: 1>} : vector<1x128xi32>
    %c42_i32 = arith.constant 42 : i32
    %23 = vector.broadcast %c42_i32 : i32 to vector<1x128xi32>
    %24 = arith.cmpi slt, %22, %23 : vector<1x128xi32>
    %25 = arith.extui %24 : vector<1x128xi1> to vector<1x128xi32>
    %26 = arith.sitofp %25 : vector<1x128xi32> to vector<1x128xf32>
    %27 = arith.subf %2, %21 : vector<4x128xf32>
    %28 = arith.mulf %27, %27 : vector<4x128xf32>
    %29 = vector.broadcast %26 : vector<1x128xf32> to vector<4x128xf32>
    %30 = arith.mulf %28, %29 : vector<4x128xf32>
    %31 = vector.shape_cast %30 : vector<4x128xf32> to vector<1x4x128xf32>
    %cst_12 = arith.constant dense<0.000000e+00> : vector<1xf32>
    %32 = vector.multi_reduction <add>, %31, %cst_12 [1, 2] : vector<1x4x128xf32> to vector<1xf32>
    %33 = vector.shape_cast %32 : vector<1xf32> to vector<1x1x1xf32>
    %34 = vector.extract %33[0, 0, 0] : f32 from vector<1x1x1xf32>
    %c48_i32 = arith.constant 48 : i32
    %35 = vector.broadcast %c48_i32 : i32 to vector<1x128xi32>
    %36 = arith.cmpi slt, %22, %35 : vector<1x128xi32>
    %37 = arith.extui %36 : vector<1x128xi1> to vector<1x128xi32>
    %38 = arith.sitofp %37 : vector<1x128xi32> to vector<1x128xf32>
    %c0_13 = arith.constant 0 : index
    %c0_14 = arith.constant 0 : index
    %39 = vector.load %arg4[%c0_13, %c0_14] : memref<1x128xf32, #tpu.memory_space<vmem>>, vector<1x128xf32>
    %40 = vector.broadcast %39 : vector<1x128xf32> to vector<4x128xf32>
    %41 = arith.mulf %2, %40 : vector<4x128xf32>
    %cst_15 = arith.constant 1.000000e+00 : f32
    %42 = vector.broadcast %cst_15 : f32 to vector<4x128xf32>
    %43 = arith.subf %41, %42 : vector<4x128xf32>
    %44 = arith.mulf %43, %43 : vector<4x128xf32>
    %45 = vector.broadcast %38 : vector<1x128xf32> to vector<4x128xf32>
    %46 = arith.mulf %44, %45 : vector<4x128xf32>
    %47 = vector.shape_cast %46 : vector<4x128xf32> to vector<1x4x128xf32>
    %cst_16 = arith.constant dense<0.000000e+00> : vector<1xf32>
    %48 = vector.multi_reduction <add>, %47, %cst_16 [1, 2] : vector<1x4x128xf32> to vector<1xf32>
    %49 = vector.shape_cast %48 : vector<1xf32> to vector<1x1x1xf32>
    %50 = vector.extract %49[0, 0, 0] : f32 from vector<1x1x1xf32>
    %51 = tpu.iota {dimensions = array<i32: 2>} : vector<1x8x128xi32>
    %c0_i32 = arith.constant 0 : i32
    %52 = vector.broadcast %c0_i32 : i32 to vector<1x8x128xi32>
    %53 = arith.cmpi eq, %51, %52 : vector<1x8x128xi32>
    %cst_17 = arith.constant 0.000000e+00 : f32
    %54 = vector.broadcast %20 : f32 to vector<1x8x128xf32>
    %55 = vector.broadcast %cst_17 : f32 to vector<1x8x128xf32>
    %56 = arith.select %53, %54, %55 : vector<1x8x128xi1>, vector<1x8x128xf32>
    %c1_i32 = arith.constant 1 : i32
    %57 = vector.broadcast %c1_i32 : i32 to vector<1x8x128xi32>
    %58 = arith.cmpi eq, %51, %57 : vector<1x8x128xi32>
    %cst_18 = arith.constant 0.000000e+00 : f32
    %59 = vector.broadcast %34 : f32 to vector<1x8x128xf32>
    %60 = vector.broadcast %cst_18 : f32 to vector<1x8x128xf32>
    %61 = arith.select %58, %59, %60 : vector<1x8x128xi1>, vector<1x8x128xf32>
    %62 = arith.addf %56, %61 : vector<1x8x128xf32>
    %c2_i32 = arith.constant 2 : i32
    %63 = vector.broadcast %c2_i32 : i32 to vector<1x8x128xi32>
    %64 = arith.cmpi eq, %51, %63 : vector<1x8x128xi32>
    %cst_19 = arith.constant 0.000000e+00 : f32
    %65 = vector.broadcast %50 : f32 to vector<1x8x128xf32>
    %66 = vector.broadcast %cst_19 : f32 to vector<1x8x128xf32>
    %67 = arith.select %64, %65, %66 : vector<1x8x128xi1>, vector<1x8x128xf32>
    %68 = arith.addf %62, %67 : vector<1x8x128xf32>
    %c0_20 = arith.constant 0 : index
    %c0_21 = arith.constant 0 : index
    %c0_22 = arith.constant 0 : index
    %69 = vector.load %arg8[%c0_20, %c0_21, %c0_22] : memref<1x8x128xf32, #tpu.memory_space<vmem>>, vector<1x8x128xf32>
    tpu.vector_store %arg8[%c0_20, %c0_21, %c0_22], %68 {strides = array<i32>} : memref<1x8x128xf32, #tpu.memory_space<vmem>>, vector<1x8x128xf32>,
    return
  }
  func.func @transform_0(%arg0: i32) -> (i32, i32) {
    %c0_i32 = arith.constant 0 : i32
    %c0_i32_0 = arith.constant 0 : i32
    return %arg0, %c0_i32 : i32, i32
  }
  func.func @transform_1(%arg0: i32) -> (i32, i32) {
    %c0_i32 = arith.constant 0 : i32
    %c0_i32_0 = arith.constant 0 : i32
    return %arg0, %c0_i32 : i32, i32
  }
  func.func @transform_2(%arg0: i32) -> (i32, i32) {
    %c0_i32 = arith.constant 0 : i32
    %c0_i32_0 = arith.constant 0 : i32
    %c0_i32_1 = arith.constant 0 : i32
    return %c0_i32, %c0_i32_0 : i32, i32
  }
  func.func @transform_3(%arg0: i32) -> (i32, i32) {
    %c0_i32 = arith.constant 0 : i32
    %c0_i32_0 = arith.constant 0 : i32
    %c0_i32_1 = arith.constant 0 : i32
    return %c0_i32, %c0_i32_0 : i32, i32
  }
  func.func @transform_4(%arg0: i32) -> (i32, i32) {
    %c0_i32 = arith.constant 0 : i32
    %c0_i32_0 = arith.constant 0 : i32
    return %arg0, %c0_i32 : i32, i32
  }
  func.func @transform_5(%arg0: i32) -> (i32, i32) {
    %c0_i32 = arith.constant 0 : i32
    %c0_i32_0 = arith.constant 0 : i32
    return %arg0, %c0_i32 : i32, i32
  }
  func.func @transform_6(%arg0: i32) -> (i32, i32) {
    %c0_i32 = arith.constant 0 : i32
    %c0_i32_0 = arith.constant 0 : i32
    return %arg0, %c0_i32 : i32, i32
  }
  func.func @transform_7(%arg0: i32) -> (i32, i32, i32) {
    %c0_i32 = arith.constant 0 : i32
    %c0_i32_0 = arith.constant 0 : i32
    %c0_i32_1 = arith.constant 0 : i32
    return %arg0, %c0_i32, %c0_i32_0 : i32, i32, i32
  }
}

</mosaic_0001>

<bundles_post_ra>
// kernel: tile.8
= control target key start
LH: loop header
LB: loop body
LE: loop exit
PB: predicated region body
PF: predicated region fallthrough
CT: control target
= control target key end

     0   :  { %s22_s0 = inlined_call_operand.vmem [shape: f32[6], index: 0, kind: input, shape index: {}]   ;;  %s23_s1 = inlined_call_operand.vmem [shape: f32[8,6], index: 1, kind: output, shape index: {}]  }
   0x1   :  { %v4_v0 = vld [vmem:[%s22_s0] ss:$0 sm:$0xff] }
   0x2   :  { %5 = vst [vmem:[%s23_s1] sm:$0xff] %v4_v0 }

// kernel: tile.9
= control target key start
LH: loop header
LB: loop body
LE: loop exit
PB: predicated region body
PF: predicated region fallthrough
CT: control target
= control target key end

     0   :  { %s67_s10 = smov 42   ;;  %s68_s11 = smov 30   ;;  %vm3_vm0 = vcmask 48128   ;;  %vm9_vm1 = vcmask 392528   ;;  %vm15_vm2 = vcmask 343328   ;;  %vm21_vm3 = vcmask 294128   ;;  %s111_s0 = inlined_call_operand.vmem [shape: f32[8,6], index: 0, kind: input, shape index: {}]   ;;  %s112_s1 = inlined_call_operand.vmem [shape: f32[48], index: 1, kind: output, shape index: {}]  }
   0x1   :  { %v53_v0 = vld [vmem:[%s111_s0 + $0x7] sm:$0x1]   ;;  %v55_v1 = vld [vmem:[%s111_s0 + $0x5] sm:$0x1]   ;;  %v54_v2 = vld [vmem:[%s111_s0 + $0x6] sm:$0x1]  }
   0x2   :  { %7 = vrot.lane.b32.xlu0 %v53_v0, %s67_s10  ;;  %19 = vrot.lane.b32.xlu1 %v55_v1, %s68_s11  ;;  %v56_v3 = vld [vmem:[%s111_s0 + $0x4] sm:$0x1]   ;;  %v2_v4 = vld [vmem:[%s111_s0] sm:$0x1]   ;;  %s69_s18 = smov 36   ;;  %s70_s19 = smov 24  }
   0x3   :  { %4 = vst.msk [vmem:[#allocation0] sm:$0x1] %vm3_vm0, %v2_v4   ;;  %v57_v5 = vld [vmem:[%s111_s0 + $0x3] sm:$0x1]   ;;  %v58_v6 = vld [vmem:[%s111_s0 + $0x2] sm:$0x1]  }
   0x4   :  { %s71_s24 = smov 18   ;;  %s72_s25 = smov 12   ;;  %v59_v7 = vld [vmem:[%s111_s0 + $0x1] sm:$0x1]   ;;  %vm27_vm4 = vcmask 244928   ;;  %vm33_vm5 = vcmask 195728  }
   0x5   :  { %s73_s0 = smov 6   ;;  %vm39_vm6 = vcmask 146528   ;;  %vm45_vm7 = vcmask 97328  }
   0x6   :  { %13 = vrot.lane.b32.xlu0 %v54_v2, %s69_s18  ;;  %25 = vrot.lane.b32.xlu1 %v56_v3, %s70_s19 }
   0xa   :  { %31 = vrot.lane.b32.xlu0 %v57_v5, %s71_s24  ;;  %37 = vrot.lane.b32.xlu1 %v58_v6, %s72_s25 }
   0xe   :  { %43 = vrot.lane.b32.xlu0 %v59_v7, %s73_s0 }
  0x74   :  { %v8_v8 = vpop.permute.xlu0 %7   ;;  %v20_v9 = vpop.permute.xlu1 %19  }
  0x75   :  { %10 = vst.msk [vmem:[#allocation0] sm:$0x1] %vm9_vm1, %v8_v8  }
  0x78   :  { %v14_v10 = vpop.permute.xlu0 %13   ;;  %v26_v11 = vpop.permute.xlu1 %25  }
  0x79   :  { %16 = vst.msk [vmem:[#allocation0] sm:$0x1] %vm15_vm2, %v14_v10  }
  0x7a   :  { %22 = vst.msk [vmem:[#allocation0] sm:$0x1] %vm21_vm3, %v20_v9  }
  0x7b   :  { %28 = vst.msk [vmem:[#allocation0] sm:$0x1] %vm27_vm4, %v26_v11  }
  0x7c   :  { %v32_v12 = vpop.permute.xlu0 %31   ;;  %v38_v13 = vpop.permute.xlu1 %37  }
  0x7d   :  { %34 = vst.msk [vmem:[#allocation0] sm:$0x1] %vm33_vm5, %v32_v12  }
  0x7e   :  { %40 = vst.msk [vmem:[#allocation0] sm:$0x1] %vm39_vm6, %v38_v13  }
  0x80   :  { %v44_v14 = vpop.permute.xlu0 %43  }
  0x81   :  { %46 = vst.msk [vmem:[#allocation0] sm:$0x1] %vm45_vm7, %v44_v14  }
  0x88   :  { %v50_v15 = vld [vmem:[#allocation0] sm:$0x1] }
  0x89   :  { %52 = vst [vmem:[%s112_s1] sm:$0x1] %v50_v15 }

// kernel: regularization_theta_per_step.1
= control target key start
LH: loop header
LB: loop body
LE: loop exit
PB: predicated region body
PF: predicated region fallthrough
CT: control target
= control target key end

     0   :  { %v141_v0 = vmov 0   ;;  %s142_s28 = smov 122   ;;  %v67_v3 = vlaneseq  ;;  %v143_v17 = vmov 0.0   ;;  %vm48_vm3 = vcmask 1043456   ;;  %s215_s0 = inlined_call_operand.vmem [shape: f32[4,1], index: 0, kind: input, shape index: {}]   ;;  %s216_s6 = inlined_call_operand.vmem [shape: f32[4,128], index: 6, kind: input, shape index: {}]   ;;  %s217_s4 = inlined_call_operand.vmem [shape: f32[4,128], index: 4, kind: input, shape index: {}]   ;;  %s218_s5 = inlined_call_operand.vmem [shape: f32[4,128], index: 5, kind: input, shape index: {}]   ;;  %s219_s3 = inlined_call_operand.vmem [shape: f32[1,128], index: 3, kind: input, shape index: {}]   ;;  %s220_s2 = inlined_call_operand.vmem [shape: f32[1,128], index: 2, kind: input, shape index: {}]   ;;  %s221_s1 = inlined_call_operand.vmem [shape: f32[4,1], index: 1, kind: input, shape index: {}]   ;;  %s222_s7 = inlined_call_operand.vmem [shape: f32[1,8,128], index: 7, kind: output, shape index: {}]  }
   0x1   :  { %140 = vset.pattern.permute.xlu0 %v141_v0  ;;  %v32_v1 = vld [vmem:[%s215_s0] sm:$0xf]  ;;  %vm54_vm4 = vcmask 3072  }
   0x2   :  { %41 = vperm.xlu0 %140, %v32_v1   ;;  %v28_v2 = vld [vmem:[%s216_s6] sm:$0xf]  ;;  %v199_v7 = vand.u32 127, %v67_v3 }
   0x3   :  { %65 = vrot.lane.b32.xlu1 %v28_v2, %s142_s28  ;;  %v26_v4 = vld [vmem:[%s217_s4] sm:$0xf] }
   0x4   :  { %v27_v5 = vld [vmem:[%s218_s5] sm:$0xf]  ;;  %vm69_vm0 = vcmp.lt.s32.totalorder %v199_v7, 42  ;;  %vm85_vm2 = vcmp.lt.s32.totalorder %v199_v7, 48  ;;  %vm109_vm5 = vcmp.eq.s32.totalorder %v199_v7, 0  ;;  %vm112_vm6 = vcmp.eq.s32.totalorder %v199_v7, 1 }
   0x5   :  { %v129_v6 = vld [vmem:[%s219_s3] ss:$0 sm:$0xff]  ;;  %v29_v9 = vsub.f32 %v26_v4, %v27_v5  ;;  %v127_v18 = vsel %vm69_vm0, 1.0, %v143_v17  ;;  %v128_v23 = vsel %vm85_vm2, 1.0, %v143_v17  ;;  %vm116_vm7 = vcmp.eq.s32.totalorder %v199_v7, 2 }
   0x6   :  { %v95_v10 = vmul.f32 %v129_v6, %v28_v2  ;;  %v125_v12 = vld [vmem:[%s220_s2] ss:$0 sm:$0xff] }
   0x7   :  { %v30_v13 = vmul.f32 %v29_v9, %v29_v9  ;;  %v52_v28 = vld [vmem:[%s221_s1] sm:$0xf] }
   0x8   :  { %v130_v14 = vadd.f32 -1.0, %v95_v10 }
   0xa   :  { %v97_v22 = vmul.f32 %v130_v14, %v130_v14 }
   0xc   :  { %v98_v26 = vmul.f32 %v128_v23, %v97_v22 }
   0xe   :  { %v99_v27 = vsel %vm48_vm3, %v98_v26, 0.0 }
  0x75   :  { %v66_v8 = vpop.permute.xlu1 %65 }
  0x76   :  { %v72_v11 = vsub.f32 %v28_v2, %v66_v8 }
  0x78   :  { %v73_v15 = vmul.f32 %v72_v11, %v72_v11 }
  0x7a   :  { %v74_v21 = vmul.f32 %v127_v18, %v73_v15 }
  0x7c   :  { %v75_v25 = vsel %vm48_vm3, %v74_v21, 0.0 }
  0x81   :  { %v42_v16 = vpop.permute.xlu0 %41 }
  0x82   :  { %vm44_vm1 = vcmp.lt.f32.partialorder %v125_v12, %v42_v16 }
  0x83   :  { %v126_v19 = vsel %vm44_vm1, 1.0, %v143_v17 }
  0x84   :  { %v47_v20 = vmul.f32 %v126_v19, %v30_v13 }
  0x86   :  { %v49_v24 = vsel %vm48_vm3, %v47_v20, 0.0 }
  0x87   :  { %50 = vadd.xlane.f32.xlu0 %v49_v24 }
  0x8b   :  { %76 = vadd.xlane.f32.xlu0 %v75_v25 }
  0x8f   :  { %100 = vadd.xlane.f32.xlu0 %v99_v27 }
 0x114   :  { %v51_v29 = vpop.xlane.xlu0 %50 }
 0x115   :  { %v53_v30 = vmul.f32 %v52_v28, %v51_v29 }
 0x117   :  { %v55_v31 = vsel %vm54_vm4, %v53_v30, 0.0 }
 0x118   :  { %56 = vadd.xlane.f32.xlu1 %v55_v31  ;;  %v77_v32 = vpop.xlane.xlu0 %76 }
 0x119   :  { %v78_v34 = vrot.slane %v77_v32, 4 }
 0x11b   :  { %v79_v36 = vadd.f32 %v78_v34, %v77_v32 }
 0x11c   :  { %v101_v33 = vpop.xlane.xlu0 %100 }
 0x11d   :  { %v102_v35 = vrot.slane %v101_v33, 4  ;;  %v80_v38 = vrot.slane %v79_v36, 2 }
 0x11f   :  { %v103_v37 = vadd.f32 %v102_v35, %v101_v33  ;;  %v81_v43 = vadd.f32 %v80_v38, %v79_v36 }
 0x121   :  { %v104_v40 = vrot.slane %v103_v37, 2  ;;  %v82_v47 = vrot.slane %v81_v43, 1 }
 0x123   :  { %v105_v44 = vadd.f32 %v104_v40, %v103_v37  ;;  %v83_v51 = vadd.f32 %v82_v47, %v81_v43 }
 0x125   :  { %v106_v49 = vrot.slane %v105_v44, 1 }
 0x127   :  { %v107_v52 = vadd.f32 %v106_v49, %v105_v44 }
 0x1a5   :  { %v57_v39 = vpop.xlane.xlu1 %56 }
 0x1a6   :  { %v58_v41 = vrot.slane %v57_v39, 4 }
 0x1a8   :  { %v59_v42 = vadd.f32 %v58_v41, %v57_v39 }
 0x1aa   :  { %v60_v45 = vrot.slane %v59_v42, 2 }
 0x1ac   :  { %v61_v46 = vadd.f32 %v60_v45, %v59_v42 }
 0x1ae   :  { %v62_v48 = vrot.slane %v61_v46, 1 }
 0x1b0   :  { %v63_v50 = vadd.f32 %v62_v48, %v61_v46 }
 0x1b2   :  { %131 = vpush %v63_v50 }
 0x1b3   :  { %133 = vpush %v83_v51 }
 0x1b4   :  { %135 = vpush %v107_v52 }
 0x1e3   :  { %s132_s1 = spop %131 }
 0x1e4   :  { %v110_v53 = vstv %s132_s1  ;;  %s134_s4 = spop %133 }
 0x1e5   :  { %v111_v54 = vsel %vm109_vm5, %v110_v53, 0.0  ;;  %v113_v55 = vstv %s134_s4  ;;  %s136_s5 = spop %135 }
 0x1e6   :  { %v114_v56 = vsel %vm112_vm6, %v113_v55, 0.0  ;;  %v117_v57 = vstv %s136_s5 }
 0x1e7   :  { %v115_v58 = vadd.f32 %v114_v56, %v111_v54  ;;  %v118_v59 = vsel %vm116_vm7, %v117_v57, 0.0 }
 0x1e9   :  { %v119_v60 = vadd.f32 %v118_v59, %v115_v58 }
 0x1eb   :  { %120 = vst [vmem:[%s222_s7] sm:$0xff] %v119_v60 }

</bundles_post_ra>
